<compile_context>
chip_gen: v7x
topology: tpu7x:2x2x1
jax: 0.10.0
libtpu: 0.0.40
codegen_flags: <defaults>
</compile_context>

<pallas_src>
import jax
import jax.numpy as jnp
from jax.experimental import pallas as pl
from jax.experimental.pallas import tpu as pltpu

# ---- problem sizes (small, consistent with an image-classification backbone) ----
B, C_IN, H, W = 2, 4, 16, 16
C_OUT = 32                 # backbone last_dim
KH = KW = 3
HW = H * W                 # 256  (lane-dense: multiple of 128)
BHW = B * HW               # 512
KKC = KH * KW * C_IN       # 36   (im2col contraction dim)
K_AUG = KKC + 1            # 37   (+ ones row -> conv bias folded into matmul)
M_AUG = C_OUT + 1          # 33   (+ constant-1 feature -> energy bias folded)
OUT_LANES = 128            # lane-dense output block


def _shift_cols(x2, off):
    """A[:, j] = x2[:, j + off] when 0 <= j + off < n, else 0 (zero fill, no wrap)."""
    n = x2.shape[1]
    if off == 0:
        return x2
    z = jnp.zeros((x2.shape[0], abs(off)), x2.dtype)
    if off > 0:
        return jnp.concatenate([x2[:, off:], z], axis=1)
    return jnp.concatenate([z, x2[:, :n + off]], axis=1)


def f_energy_kernel(x_ref, w_ref, head_ref, out_ref, patches_ref):
    """Single grid step — whole (tiny) problem at once.

    x_ref      : (B*C_IN, HW)    input images; rows (b, c_in), cols (h, w)
    w_ref      : (M_AUG, K_AUG)  [conv weight (kh,kw,c order) | conv bias] plus a
                                 last row selecting the ones row (constant-1 feat)
    head_ref   : (1, M_AUG)      [energy_output.weight | energy_output.bias]
    out_ref    : (1, 128)        lane-dense output; lane b holds energy of batch b
    patches_ref: (K_AUG, BHW)    VMEM scratch: im2col patch matrix + ones row
    """
    x2 = x_ref[...]                                         # (8, 256) f32

    lane = jax.lax.broadcasted_iota(jnp.int32, (B * C_IN, HW), 1)
    wi = lane % W                                           # x-coordinate in each image row

    # Bias row of the patch matrix: constant ones.
    patches_ref[KKC:K_AUG, :] = jnp.ones((1, BHW), jnp.float32)

    # In-kernel im2col: 9 shifted + masked copies of the input.  The h-boundary
    # ("same" padding in h) is handled by the zero-fill shift; only the
    # w-boundary needs an explicit mask.
    for kh in range(KH):
        for kw in range(KW):
            dh, dw = kh - 1, kw - 1
            shifted = _shift_cols(x2, dh * W + dw)          # (8, 256)
            valid = (wi + dw >= 0) & (wi + dw < W)
            tapv = jnp.where(valid, shifted, 0.0)
            r0 = (kh * KW + kw) * C_IN
            for b in range(B):                              # batch -> column blocks (b, h, w)
                patches_ref[r0:r0 + C_IN, b * HW:(b + 1) * HW] = \
                    tapv[b * C_IN:(b + 1) * C_IN, :]

    # Fused 3x3 conv + bias (+ constant-1 feature row): one MXU matmul (33,37)x(37,512).
    acc = jnp.dot(w_ref[...], patches_ref[...], preferred_element_type=jnp.float32)
    acc = jnp.maximum(acc, 0.0)                             # relu(1) == 1 keeps the const row

    # Energy head folded before pooling (linear ops commute with the mean):
    # z[0, col] = we . feat[:, col] + be
    z = jnp.dot(head_ref[...], acc, preferred_element_type=jnp.float32)   # (1, 512)

    # Global average pool per batch = mean over that batch's contiguous 256-lane block.
    out_lane = jax.lax.broadcasted_iota(jnp.int32, (1, OUT_LANES), 1)
    out = jnp.zeros((1, OUT_LANES), jnp.float32)
    for b in range(B):
        e_b = jnp.sum(z[:, b * HW:(b + 1) * HW]) * (1.0 / HW)
        out = jnp.where(out_lane == b, e_b, out)
    out_ref[...] = out


def f_forward(x, params):
    """Pallas equivalent of F.forward(x):  energy_output(f(x)).squeeze()."""
    wc, bc, we, be = params

    # ---- wrapper-side plumbing: parameter-sized ops only, x is a pure reshape ----
    x2d = x.reshape(B * C_IN, HW)                              # metadata-only reshape
    w_flat = wc.transpose(0, 2, 3, 1).reshape(C_OUT, KKC)      # columns ordered (kh, kw, c_in)
    w_aug = jnp.concatenate([w_flat, bc.reshape(C_OUT, 1)], axis=1)            # (32, 37)
    ones_sel = jnp.zeros((1, K_AUG), jnp.float32).at[0, KKC].set(1.0)          # const-1 feature
    w_aug = jnp.concatenate([w_aug, ones_sel], axis=0)                         # (33, 37)
    head = jnp.concatenate([we.reshape(1, C_OUT), be.reshape(1, 1)], axis=1)   # (1, 33)

    cost = pl.CostEstimate(
        flops=2 * M_AUG * K_AUG * BHW + 2 * M_AUG * BHW,
        transcendentals=0,
        bytes_accessed=4 * (B * C_IN * HW + M_AUG * K_AUG + M_AUG + OUT_LANES),
    )

    out = pl.pallas_call(
        f_energy_kernel,
        out_shape=jax.ShapeDtypeStruct((1, OUT_LANES), jnp.float32),
        grid_spec=pltpu.PrefetchScalarGridSpec(
            num_scalar_prefetch=0,
            grid=(1,),
            in_specs=[
                pl.BlockSpec((B * C_IN, HW), lambda i: (0, 0)),
                pl.BlockSpec((M_AUG, K_AUG), lambda i: (0, 0)),
                pl.BlockSpec((1, M_AUG), lambda i: (0, 0)),
            ],
            out_specs=pl.BlockSpec((1, OUT_LANES), lambda i: (0, 0)),
            scratch_shapes=[pltpu.VMEM((K_AUG, BHW), jnp.float32)],
        ),
        compiler_params=pltpu.CompilerParams(
            dimension_semantics=("arbitrary",)),
        cost_estimate=cost,
    )(x2d, w_aug, head)

    return jnp.squeeze(out[:, :B])   # matches PyTorch .squeeze(): (1, B) -> (B,)


def f_forward_ref(x, params):
    """Pure-JAX reference for correctness checking (direct 9-tap conv)."""
    wc, bc, we, be = params
    xp = jnp.pad(x, ((0, 0), (0, 0), (1, 1), (1, 1)))
    outs = []
    for b in range(B):
        acc = jnp.zeros((C_OUT, HW), jnp.float32)
        for kh in range(KH):
            for kw in range(KW):
                patch = xp[b, :, kh:kh + H, kw:kw + W].reshape(C_IN, HW)
                acc = acc + wc[:, :, kh, kw] @ patch
        acc = jnp.maximum(acc + bc, 0.0)
        feat = jnp.mean(acc, axis=1, keepdims=True)
        outs.append((we @ feat + be)[0, 0])
    return jnp.stack(outs)


def init_params(key):
    k1, k2, k3, k4 = jax.random.split(key, 4)
    wc = jax.random.normal(k1, (C_OUT, C_IN, KH, KW), jnp.float32) * 0.1
    bc = jax.random.normal(k2, (C_OUT, 1), jnp.float32) * 0.1
    we = jax.random.normal(k3, (1, C_OUT), jnp.float32) * 0.1
    be = jax.random.normal(k4, (1, 1), jnp.float32) * 0.1
    return wc, bc, we, be


if __name__ == "__main__":
    key = jax.random.PRNGKey(0)
    kx, kp = jax.random.split(key)
    x = jax.random.normal(kx, (B, C_IN, H, W), jnp.float32)   # NCHW like PyTorch
    params = init_params(kp)

    out = jax.jit(f_forward)(x, params)
    out = jax.block_until_ready(out)

    ref = f_forward_ref(x, params)
    assert out.shape == (B,), out.shape
    assert jnp.allclose(out, ref, atol=1e-4, rtol=1e-4), (out, ref)

    print("KERNEL_OK")
</pallas_src>

<mosaic_0001>
module attributes {stable_mosaic.version = 11 : i64} {
  func.func @f_energy_kernel(%arg0: i32, %arg1: memref<8x256xf32, #tpu.memory_space<vmem>>, %arg2: memref<33x37xf32, #tpu.memory_space<vmem>>, %arg3: memref<1x33xf32, #tpu.memory_space<vmem>>, %arg4: memref<1x128xf32, #tpu.memory_space<vmem>>, %arg5: memref<37x512xf32, #tpu.memory_space<vmem>>) attributes {dimension_semantics = [#tpu.dimension_semantics<arbitrary>], iteration_bounds = array<i64: 1>, scalar_prefetch = 0 : i64, scratch_operands = 1 : i64, tpu.core_type = #tpu.core_type<tc>, window_params = [{pipeline_mode = #tpu.pipeline_mode<synchronous>, transform_indices = @transform_0, window_bounds = array<i64: 8, 256>}, {pipeline_mode = #tpu.pipeline_mode<synchronous>, transform_indices = @transform_1, window_bounds = array<i64: 33, 37>}, {pipeline_mode = #tpu.pipeline_mode<synchronous>, transform_indices = @transform_2, window_bounds = array<i64: 1, 33>}, {pipeline_mode = #tpu.pipeline_mode<synchronous>, transform_indices = @transform_3, window_bounds = array<i64: 1, 128>}]} {
    %c0 = arith.constant 0 : index
    %c0_0 = arith.constant 0 : index
    %0 = vector.load %arg1[%c0, %c0_0] : memref<8x256xf32, #tpu.memory_space<vmem>>, vector<8x256xf32>
    %1 = tpu.iota {dimensions = array<i32: 1>} : vector<8x256xi32>
    %c16_i32 = arith.constant 16 : i32
    %c0_i32 = arith.constant 0 : i32
    %2 = arith.cmpi eq, %c16_i32, %c0_i32 : i32
    %c1_i32 = arith.constant 1 : i32
    %3 = arith.select %2, %c1_i32, %c16_i32 : i32
    %4 = vector.broadcast %3 : i32 to vector<8x256xi32>
    %5 = arith.remsi %1, %4 : vector<8x256xi32>
    %c0_i32_1 = arith.constant 0 : i32
    %6 = vector.broadcast %c0_i32_1 : i32 to vector<8x256xi32>
    %7 = arith.cmpi ne, %5, %6 : vector<8x256xi32>
    %c0_i32_2 = arith.constant 0 : i32
    %8 = vector.broadcast %c0_i32_2 : i32 to vector<8x256xi32>
    %9 = arith.cmpi slt, %5, %8 : vector<8x256xi32>
    %c0_i32_3 = arith.constant 0 : i32
    %10 = arith.cmpi slt, %3, %c0_i32_3 : i32
    %11 = vector.broadcast %10 : i1 to vector<8x256xi1>
    %12 = vector.broadcast %11 : vector<8x256xi1> to vector<8x256xi1>
    %13 = arith.xori %9, %12 : vector<8x256xi1>
    %14 = arith.andi %13, %7 : vector<8x256xi1>
    %15 = vector.broadcast %3 : i32 to vector<8x256xi32>
    %16 = arith.addi %5, %15 : vector<8x256xi32>
    %17 = arith.select %14, %16, %5 : vector<8x256xi1>, vector<8x256xi32>
    %cst = arith.constant 1.000000e+00 : f32
    %18 = vector.broadcast %cst : f32 to vector<1x512xf32>
    %c36 = arith.constant 36 : index
    %c0_4 = arith.constant 0 : index
    %19 = vector.load %arg5[%c36, %c0_4] : memref<37x512xf32, #tpu.memory_space<vmem>>, vector<1x512xf32>
    tpu.vector_store %arg5[%c36, %c0_4], %18 {strides = array<i32>} : memref<37x512xf32, #tpu.memory_space<vmem>>, vector<1x512xf32>,
    %cst_5 = arith.constant 0.000000e+00 : f32
    %20 = vector.broadcast %cst_5 : f32 to vector<8x17xf32>
    %21 = vector.extract_strided_slice %0 {offsets = [0, 0], sizes = [8, 239], strides = [1, 1]} : vector<8x256xf32> to vector<8x239xf32>
    %22 = tpu.concatenate %20, %21 in 1 : vector<8x17xf32>, vector<8x239xf32> -> vector<8x256xf32>
    %c-1_i32 = arith.constant -1 : i32
    %23 = vector.broadcast %c-1_i32 : i32 to vector<8x256xi32>
    %24 = arith.addi %17, %23 : vector<8x256xi32>
    %c0_i32_6 = arith.constant 0 : i32
    %25 = vector.broadcast %c0_i32_6 : i32 to vector<8x256xi32>
    %26 = arith.cmpi sge, %24, %25 : vector<8x256xi32>
    %c-1_i32_7 = arith.constant -1 : i32
    %27 = vector.broadcast %c-1_i32_7 : i32 to vector<8x256xi32>
    %28 = arith.addi %17, %27 : vector<8x256xi32>
    %c16_i32_8 = arith.constant 16 : i32
    %29 = vector.broadcast %c16_i32_8 : i32 to vector<8x256xi32>
    %30 = arith.cmpi slt, %28, %29 : vector<8x256xi32>
    %31 = arith.andi %26, %30 : vector<8x256xi1>
    %cst_9 = arith.constant 0.000000e+00 : f32
    %32 = vector.broadcast %cst_9 : f32 to vector<8x256xf32>
    %33 = arith.select %31, %22, %32 : vector<8x256xi1>, vector<8x256xf32>
    %34 = vector.extract_strided_slice %33 {offsets = [0, 0], sizes = [4, 256], strides = [1, 1]} : vector<8x256xf32> to vector<4x256xf32>
    %c0_10 = arith.constant 0 : index
    %c0_11 = arith.constant 0 : index
    %35 = vector.load %arg5[%c0_10, %c0_11] : memref<37x512xf32, #tpu.memory_space<vmem>>, vector<4x256xf32>
    tpu.vector_store %arg5[%c0_10, %c0_11], %34 {strides = array<i32>} : memref<37x512xf32, #tpu.memory_space<vmem>>, vector<4x256xf32>,
    %36 = vector.extract_strided_slice %33 {offsets = [4, 0], sizes = [4, 256], strides = [1, 1]} : vector<8x256xf32> to vector<4x256xf32>
    %c0_12 = arith.constant 0 : index
    %c256 = arith.constant 256 : index
    %37 = vector.load %arg5[%c0_12, %c256] : memref<37x512xf32, #tpu.memory_space<vmem>>, vector<4x256xf32>
    tpu.vector_store %arg5[%c0_12, %c256], %36 {strides = array<i32>} : memref<37x512xf32, #tpu.memory_space<vmem>>, vector<4x256xf32>,
    %cst_13 = arith.constant 0.000000e+00 : f32
    %38 = vector.broadcast %cst_13 : f32 to vector<8x16xf32>
    %39 = vector.extract_strided_slice %0 {offsets = [0, 0], sizes = [8, 240], strides = [1, 1]} : vector<8x256xf32> to vector<8x240xf32>
    %40 = tpu.concatenate %38, %39 in 1 : vector<8x16xf32>, vector<8x240xf32> -> vector<8x256xf32>
    %c0_i32_14 = arith.constant 0 : i32
    %41 = vector.broadcast %c0_i32_14 : i32 to vector<8x256xi32>
    %42 = arith.addi %17, %41 : vector<8x256xi32>
    %c0_i32_15 = arith.constant 0 : i32
    %43 = vector.broadcast %c0_i32_15 : i32 to vector<8x256xi32>
    %44 = arith.cmpi sge, %42, %43 : vector<8x256xi32>
    %c0_i32_16 = arith.constant 0 : i32
    %45 = vector.broadcast %c0_i32_16 : i32 to vector<8x256xi32>
    %46 = arith.addi %17, %45 : vector<8x256xi32>
    %c16_i32_17 = arith.constant 16 : i32
    %47 = vector.broadcast %c16_i32_17 : i32 to vector<8x256xi32>
    %48 = arith.cmpi slt, %46, %47 : vector<8x256xi32>
    %49 = arith.andi %44, %48 : vector<8x256xi1>
    %cst_18 = arith.constant 0.000000e+00 : f32
    %50 = vector.broadcast %cst_18 : f32 to vector<8x256xf32>
    %51 = arith.select %49, %40, %50 : vector<8x256xi1>, vector<8x256xf32>
    %52 = vector.extract_strided_slice %51 {offsets = [0, 0], sizes = [4, 256], strides = [1, 1]} : vector<8x256xf32> to vector<4x256xf32>
    %c4 = arith.constant 4 : index
    %c0_19 = arith.constant 0 : index
    %53 = vector.load %arg5[%c4, %c0_19] : memref<37x512xf32, #tpu.memory_space<vmem>>, vector<4x256xf32>
    tpu.vector_store %arg5[%c4, %c0_19], %52 {strides = array<i32>} : memref<37x512xf32, #tpu.memory_space<vmem>>, vector<4x256xf32>,
    %54 = vector.extract_strided_slice %51 {offsets = [4, 0], sizes = [4, 256], strides = [1, 1]} : vector<8x256xf32> to vector<4x256xf32>
    %c4_20 = arith.constant 4 : index
    %c256_21 = arith.constant 256 : index
    %55 = vector.load %arg5[%c4_20, %c256_21] : memref<37x512xf32, #tpu.memory_space<vmem>>, vector<4x256xf32>
    tpu.vector_store %arg5[%c4_20, %c256_21], %54 {strides = array<i32>} : memref<37x512xf32, #tpu.memory_space<vmem>>, vector<4x256xf32>,
    %cst_22 = arith.constant 0.000000e+00 : f32
    %56 = vector.broadcast %cst_22 : f32 to vector<8x15xf32>
    %57 = vector.extract_strided_slice %0 {offsets = [0, 0], sizes = [8, 241], strides = [1, 1]} : vector<8x256xf32> to vector<8x241xf32>
    %58 = tpu.concatenate %56, %57 in 1 : vector<8x15xf32>, vector<8x241xf32> -> vector<8x256xf32>
    %c1_i32_23 = arith.constant 1 : i32
    %59 = vector.broadcast %c1_i32_23 : i32 to vector<8x256xi32>
    %60 = arith.addi %17, %59 : vector<8x256xi32>
    %c0_i32_24 = arith.constant 0 : i32
    %61 = vector.broadcast %c0_i32_24 : i32 to vector<8x256xi32>
    %62 = arith.cmpi sge, %60, %61 : vector<8x256xi32>
    %c1_i32_25 = arith.constant 1 : i32
    %63 = vector.broadcast %c1_i32_25 : i32 to vector<8x256xi32>
    %64 = arith.addi %17, %63 : vector<8x256xi32>
    %c16_i32_26 = arith.constant 16 : i32
    %65 = vector.broadcast %c16_i32_26 : i32 to vector<8x256xi32>
    %66 = arith.cmpi slt, %64, %65 : vector<8x256xi32>
    %67 = arith.andi %62, %66 : vector<8x256xi1>
    %cst_27 = arith.constant 0.000000e+00 : f32
    %68 = vector.broadcast %cst_27 : f32 to vector<8x256xf32>
    %69 = arith.select %67, %58, %68 : vector<8x256xi1>, vector<8x256xf32>
    %70 = vector.extract_strided_slice %69 {offsets = [0, 0], sizes = [4, 256], strides = [1, 1]} : vector<8x256xf32> to vector<4x256xf32>
    %c8 = arith.constant 8 : index
    %c0_28 = arith.constant 0 : index
    %71 = vector.load %arg5[%c8, %c0_28] : memref<37x512xf32, #tpu.memory_space<vmem>>, vector<4x256xf32>
    tpu.vector_store %arg5[%c8, %c0_28], %70 {strides = array<i32>} : memref<37x512xf32, #tpu.memory_space<vmem>>, vector<4x256xf32>,
    %72 = vector.extract_strided_slice %69 {offsets = [4, 0], sizes = [4, 256], strides = [1, 1]} : vector<8x256xf32> to vector<4x256xf32>
    %c8_29 = arith.constant 8 : index
    %c256_30 = arith.constant 256 : index
    %73 = vector.load %arg5[%c8_29, %c256_30] : memref<37x512xf32, #tpu.memory_space<vmem>>, vector<4x256xf32>
    tpu.vector_store %arg5[%c8_29, %c256_30], %72 {strides = array<i32>} : memref<37x512xf32, #tpu.memory_space<vmem>>, vector<4x256xf32>,
    %cst_31 = arith.constant 0.000000e+00 : f32
    %74 = vector.broadcast %cst_31 : f32 to vector<8x1xf32>
    %75 = vector.extract_strided_slice %0 {offsets = [0, 0], sizes = [8, 255], strides = [1, 1]} : vector<8x256xf32> to vector<8x255xf32>
    %76 = tpu.concatenate %74, %75 in 1 : vector<8x1xf32>, vector<8x255xf32> -> vector<8x256xf32>
    %c-1_i32_32 = arith.constant -1 : i32
    %77 = vector.broadcast %c-1_i32_32 : i32 to vector<8x256xi32>
    %78 = arith.addi %17, %77 : vector<8x256xi32>
    %c0_i32_33 = arith.constant 0 : i32
    %79 = vector.broadcast %c0_i32_33 : i32 to vector<8x256xi32>
    %80 = arith.cmpi sge, %78, %79 : vector<8x256xi32>
    %c-1_i32_34 = arith.constant -1 : i32
    %81 = vector.broadcast %c-1_i32_34 : i32 to vector<8x256xi32>
    %82 = arith.addi %17, %81 : vector<8x256xi32>
    %c16_i32_35 = arith.constant 16 : i32
    %83 = vector.broadcast %c16_i32_35 : i32 to vector<8x256xi32>
    %84 = arith.cmpi slt, %82, %83 : vector<8x256xi32>
    %85 = arith.andi %80, %84 : vector<8x256xi1>
    %cst_36 = arith.constant 0.000000e+00 : f32
    %86 = vector.broadcast %cst_36 : f32 to vector<8x256xf32>
    %87 = arith.select %85, %76, %86 : vector<8x256xi1>, vector<8x256xf32>
    %88 = vector.extract_strided_slice %87 {offsets = [0, 0], sizes = [4, 256], strides = [1, 1]} : vector<8x256xf32> to vector<4x256xf32>
    %c12 = arith.constant 12 : index
    %c0_37 = arith.constant 0 : index
    %89 = vector.load %arg5[%c12, %c0_37] : memref<37x512xf32, #tpu.memory_space<vmem>>, vector<4x256xf32>
    tpu.vector_store %arg5[%c12, %c0_37], %88 {strides = array<i32>} : memref<37x512xf32, #tpu.memory_space<vmem>>, vector<4x256xf32>,
    %90 = vector.extract_strided_slice %87 {offsets = [4, 0], sizes = [4, 256], strides = [1, 1]} : vector<8x256xf32> to vector<4x256xf32>
    %c12_38 = arith.constant 12 : index
    %c256_39 = arith.constant 256 : index
    %91 = vector.load %arg5[%c12_38, %c256_39] : memref<37x512xf32, #tpu.memory_space<vmem>>, vector<4x256xf32>
    tpu.vector_store %arg5[%c12_38, %c256_39], %90 {strides = array<i32>} : memref<37x512xf32, #tpu.memory_space<vmem>>, vector<4x256xf32>,
    %c0_i32_40 = arith.constant 0 : i32
    %92 = vector.broadcast %c0_i32_40 : i32 to vector<8x256xi32>
    %93 = arith.addi %17, %92 : vector<8x256xi32>
    %c0_i32_41 = arith.constant 0 : i32
    %94 = vector.broadcast %c0_i32_41 : i32 to vector<8x256xi32>
    %95 = arith.cmpi sge, %93, %94 : vector<8x256xi32>
    %c0_i32_42 = arith.constant 0 : i32
    %96 = vector.broadcast %c0_i32_42 : i32 to vector<8x256xi32>
    %97 = arith.addi %17, %96 : vector<8x256xi32>
    %c16_i32_43 = arith.constant 16 : i32
    %98 = vector.broadcast %c16_i32_43 : i32 to vector<8x256xi32>
    %99 = arith.cmpi slt, %97, %98 : vector<8x256xi32>
    %100 = arith.andi %95, %99 : vector<8x256xi1>
    %cst_44 = arith.constant 0.000000e+00 : f32
    %101 = vector.broadcast %cst_44 : f32 to vector<8x256xf32>
    %102 = arith.select %100, %0, %101 : vector<8x256xi1>, vector<8x256xf32>
    %103 = vector.extract_strided_slice %102 {offsets = [0, 0], sizes = [4, 256], strides = [1, 1]} : vector<8x256xf32> to vector<4x256xf32>
    %c16 = arith.constant 16 : index
    %c0_45 = arith.constant 0 : index
    %104 = vector.load %arg5[%c16, %c0_45] : memref<37x512xf32, #tpu.memory_space<vmem>>, vector<4x256xf32>
    tpu.vector_store %arg5[%c16, %c0_45], %103 {strides = array<i32>} : memref<37x512xf32, #tpu.memory_space<vmem>>, vector<4x256xf32>,
    %105 = vector.extract_strided_slice %102 {offsets = [4, 0], sizes = [4, 256], strides = [1, 1]} : vector<8x256xf32> to vector<4x256xf32>
    %c16_46 = arith.constant 16 : index
    %c256_47 = arith.constant 256 : index
    %106 = vector.load %arg5[%c16_46, %c256_47] : memref<37x512xf32, #tpu.memory_space<vmem>>, vector<4x256xf32>
    tpu.vector_store %arg5[%c16_46, %c256_47], %105 {strides = array<i32>} : memref<37x512xf32, #tpu.memory_space<vmem>>, vector<4x256xf32>,
    %cst_48 = arith.constant 0.000000e+00 : f32
    %107 = vector.broadcast %cst_48 : f32 to vector<8x1xf32>
    %108 = vector.extract_strided_slice %0 {offsets = [0, 1], sizes = [8, 255], strides = [1, 1]} : vector<8x256xf32> to vector<8x255xf32>
    %109 = tpu.concatenate %108, %107 in 1 : vector<8x255xf32>, vector<8x1xf32> -> vector<8x256xf32>
    %c1_i32_49 = arith.constant 1 : i32
    %110 = vector.broadcast %c1_i32_49 : i32 to vector<8x256xi32>
    %111 = arith.addi %17, %110 : vector<8x256xi32>
    %c0_i32_50 = arith.constant 0 : i32
    %112 = vector.broadcast %c0_i32_50 : i32 to vector<8x256xi32>
    %113 = arith.cmpi sge, %111, %112 : vector<8x256xi32>
    %c1_i32_51 = arith.constant 1 : i32
    %114 = vector.broadcast %c1_i32_51 : i32 to vector<8x256xi32>
    %115 = arith.addi %17, %114 : vector<8x256xi32>
    %c16_i32_52 = arith.constant 16 : i32
    %116 = vector.broadcast %c16_i32_52 : i32 to vector<8x256xi32>
    %117 = arith.cmpi slt, %115, %116 : vector<8x256xi32>
    %118 = arith.andi %113, %117 : vector<8x256xi1>
    %cst_53 = arith.constant 0.000000e+00 : f32
    %119 = vector.broadcast %cst_53 : f32 to vector<8x256xf32>
    %120 = arith.select %118, %109, %119 : vector<8x256xi1>, vector<8x256xf32>
    %121 = vector.extract_strided_slice %120 {offsets = [0, 0], sizes = [4, 256], strides = [1, 1]} : vector<8x256xf32> to vector<4x256xf32>
    %c20 = arith.constant 20 : index
    %c0_54 = arith.constant 0 : index
    %122 = vector.load %arg5[%c20, %c0_54] : memref<37x512xf32, #tpu.memory_space<vmem>>, vector<4x256xf32>
    tpu.vector_store %arg5[%c20, %c0_54], %121 {strides = array<i32>} : memref<37x512xf32, #tpu.memory_space<vmem>>, vector<4x256xf32>,
    %123 = vector.extract_strided_slice %120 {offsets = [4, 0], sizes = [4, 256], strides = [1, 1]} : vector<8x256xf32> to vector<4x256xf32>
    %c20_55 = arith.constant 20 : index
    %c256_56 = arith.constant 256 : index
    %124 = vector.load %arg5[%c20_55, %c256_56] : memref<37x512xf32, #tpu.memory_space<vmem>>, vector<4x256xf32>
    tpu.vector_store %arg5[%c20_55, %c256_56], %123 {strides = array<i32>} : memref<37x512xf32, #tpu.memory_space<vmem>>, vector<4x256xf32>,
    %cst_57 = arith.constant 0.000000e+00 : f32
    %125 = vector.broadcast %cst_57 : f32 to vector<8x15xf32>
    %126 = vector.extract_strided_slice %0 {offsets = [0, 15], sizes = [8, 241], strides = [1, 1]} : vector<8x256xf32> to vector<8x241xf32>
    %127 = tpu.concatenate %126, %125 in 1 : vector<8x241xf32>, vector<8x15xf32> -> vector<8x256xf32>
    %c-1_i32_58 = arith.constant -1 : i32
    %128 = vector.broadcast %c-1_i32_58 : i32 to vector<8x256xi32>
    %129 = arith.addi %17, %128 : vector<8x256xi32>
    %c0_i32_59 = arith.constant 0 : i32
    %130 = vector.broadcast %c0_i32_59 : i32 to vector<8x256xi32>
    %131 = arith.cmpi sge, %129, %130 : vector<8x256xi32>
    %c-1_i32_60 = arith.constant -1 : i32
    %132 = vector.broadcast %c-1_i32_60 : i32 to vector<8x256xi32>
    %133 = arith.addi %17, %132 : vector<8x256xi32>
    %c16_i32_61 = arith.constant 16 : i32
    %134 = vector.broadcast %c16_i32_61 : i32 to vector<8x256xi32>
    %135 = arith.cmpi slt, %133, %134 : vector<8x256xi32>
    %136 = arith.andi %131, %135 : vector<8x256xi1>
    %cst_62 = arith.constant 0.000000e+00 : f32
    %137 = vector.broadcast %cst_62 : f32 to vector<8x256xf32>
    %138 = arith.select %136, %127, %137 : vector<8x256xi1>, vector<8x256xf32>
    %139 = vector.extract_strided_slice %138 {offsets = [0, 0], sizes = [4, 256], strides = [1, 1]} : vector<8x256xf32> to vector<4x256xf32>
    %c24 = arith.constant 24 : index
    %c0_63 = arith.constant 0 : index
    %140 = vector.load %arg5[%c24, %c0_63] : memref<37x512xf32, #tpu.memory_space<vmem>>, vector<4x256xf32>
    tpu.vector_store %arg5[%c24, %c0_63], %139 {strides = array<i32>} : memref<37x512xf32, #tpu.memory_space<vmem>>, vector<4x256xf32>,
    %141 = vector.extract_strided_slice %138 {offsets = [4, 0], sizes = [4, 256], strides = [1, 1]} : vector<8x256xf32> to vector<4x256xf32>
    %c24_64 = arith.constant 24 : index
    %c256_65 = arith.constant 256 : index
    %142 = vector.load %arg5[%c24_64, %c256_65] : memref<37x512xf32, #tpu.memory_space<vmem>>, vector<4x256xf32>
    tpu.vector_store %arg5[%c24_64, %c256_65], %141 {strides = array<i32>} : memref<37x512xf32, #tpu.memory_space<vmem>>, vector<4x256xf32>,
    %cst_66 = arith.constant 0.000000e+00 : f32
    %143 = vector.broadcast %cst_66 : f32 to vector<8x16xf32>
    %144 = vector.extract_strided_slice %0 {offsets = [0, 16], sizes = [8, 240], strides = [1, 1]} : vector<8x256xf32> to vector<8x240xf32>
    %145 = tpu.concatenate %144, %143 in 1 : vector<8x240xf32>, vector<8x16xf32> -> vector<8x256xf32>
    %c0_i32_67 = arith.constant 0 : i32
    %146 = vector.broadcast %c0_i32_67 : i32 to vector<8x256xi32>
    %147 = arith.addi %17, %146 : vector<8x256xi32>
    %c0_i32_68 = arith.constant 0 : i32
    %148 = vector.broadcast %c0_i32_68 : i32 to vector<8x256xi32>
    %149 = arith.cmpi sge, %147, %148 : vector<8x256xi32>
    %c0_i32_69 = arith.constant 0 : i32
    %150 = vector.broadcast %c0_i32_69 : i32 to vector<8x256xi32>
    %151 = arith.addi %17, %150 : vector<8x256xi32>
    %c16_i32_70 = arith.constant 16 : i32
    %152 = vector.broadcast %c16_i32_70 : i32 to vector<8x256xi32>
    %153 = arith.cmpi slt, %151, %152 : vector<8x256xi32>
    %154 = arith.andi %149, %153 : vector<8x256xi1>
    %cst_71 = arith.constant 0.000000e+00 : f32
    %155 = vector.broadcast %cst_71 : f32 to vector<8x256xf32>
    %156 = arith.select %154, %145, %155 : vector<8x256xi1>, vector<8x256xf32>
    %157 = vector.extract_strided_slice %156 {offsets = [0, 0], sizes = [4, 256], strides = [1, 1]} : vector<8x256xf32> to vector<4x256xf32>
    %c28 = arith.constant 28 : index
    %c0_72 = arith.constant 0 : index
    %158 = vector.load %arg5[%c28, %c0_72] : memref<37x512xf32, #tpu.memory_space<vmem>>, vector<4x256xf32>
    tpu.vector_store %arg5[%c28, %c0_72], %157 {strides = array<i32>} : memref<37x512xf32, #tpu.memory_space<vmem>>, vector<4x256xf32>,
    %159 = vector.extract_strided_slice %156 {offsets = [4, 0], sizes = [4, 256], strides = [1, 1]} : vector<8x256xf32> to vector<4x256xf32>
    %c28_73 = arith.constant 28 : index
    %c256_74 = arith.constant 256 : index
    %160 = vector.load %arg5[%c28_73, %c256_74] : memref<37x512xf32, #tpu.memory_space<vmem>>, vector<4x256xf32>
    tpu.vector_store %arg5[%c28_73, %c256_74], %159 {strides = array<i32>} : memref<37x512xf32, #tpu.memory_space<vmem>>, vector<4x256xf32>,
    %cst_75 = arith.constant 0.000000e+00 : f32
    %161 = vector.broadcast %cst_75 : f32 to vector<8x17xf32>
    %162 = vector.extract_strided_slice %0 {offsets = [0, 17], sizes = [8, 239], strides = [1, 1]} : vector<8x256xf32> to vector<8x239xf32>
    %163 = tpu.concatenate %162, %161 in 1 : vector<8x239xf32>, vector<8x17xf32> -> vector<8x256xf32>
    %c1_i32_76 = arith.constant 1 : i32
    %164 = vector.broadcast %c1_i32_76 : i32 to vector<8x256xi32>
    %165 = arith.addi %17, %164 : vector<8x256xi32>
    %c0_i32_77 = arith.constant 0 : i32
    %166 = vector.broadcast %c0_i32_77 : i32 to vector<8x256xi32>
    %167 = arith.cmpi sge, %165, %166 : vector<8x256xi32>
    %c1_i32_78 = arith.constant 1 : i32
    %168 = vector.broadcast %c1_i32_78 : i32 to vector<8x256xi32>
    %169 = arith.addi %17, %168 : vector<8x256xi32>
    %c16_i32_79 = arith.constant 16 : i32
    %170 = vector.broadcast %c16_i32_79 : i32 to vector<8x256xi32>
    %171 = arith.cmpi slt, %169, %170 : vector<8x256xi32>
    %172 = arith.andi %167, %171 : vector<8x256xi1>
    %cst_80 = arith.constant 0.000000e+00 : f32
    %173 = vector.broadcast %cst_80 : f32 to vector<8x256xf32>
    %174 = arith.select %172, %163, %173 : vector<8x256xi1>, vector<8x256xf32>
    %175 = vector.extract_strided_slice %174 {offsets = [0, 0], sizes = [4, 256], strides = [1, 1]} : vector<8x256xf32> to vector<4x256xf32>
    %c32 = arith.constant 32 : index
    %c0_81 = arith.constant 0 : index
    %176 = vector.load %arg5[%c32, %c0_81] : memref<37x512xf32, #tpu.memory_space<vmem>>, vector<4x256xf32>
    tpu.vector_store %arg5[%c32, %c0_81], %175 {strides = array<i32>} : memref<37x512xf32, #tpu.memory_space<vmem>>, vector<4x256xf32>,
    %177 = vector.extract_strided_slice %174 {offsets = [4, 0], sizes = [4, 256], strides = [1, 1]} : vector<8x256xf32> to vector<4x256xf32>
    %c32_82 = arith.constant 32 : index
    %c256_83 = arith.constant 256 : index
    %178 = vector.load %arg5[%c32_82, %c256_83] : memref<37x512xf32, #tpu.memory_space<vmem>>, vector<4x256xf32>
    tpu.vector_store %arg5[%c32_82, %c256_83], %177 {strides = array<i32>} : memref<37x512xf32, #tpu.memory_space<vmem>>, vector<4x256xf32>,
    %c0_84 = arith.constant 0 : index
    %c0_85 = arith.constant 0 : index
    %179 = vector.load %arg2[%c0_84, %c0_85] : memref<33x37xf32, #tpu.memory_space<vmem>>, vector<33x37xf32>
    %c0_86 = arith.constant 0 : index
    %c0_87 = arith.constant 0 : index
    %180 = vector.load %arg5[%c0_86, %c0_87] : memref<37x512xf32, #tpu.memory_space<vmem>>, vector<37x512xf32>
    %cst_88 = arith.constant dense<0.000000e+00> : vector<33x512xf32>
    %181 = tpu.matmul %179, %180, %cst_88 {dimension_numbers = #tpu.dot_dimension_numbers<[1], [0], [0], [1], [0, 0, 1, 1], [], []>} : vector<33x37xf32>, vector<37x512xf32>, vector<33x512xf32> -> vector<33x512xf32>
    %cst_89 = arith.constant 0.000000e+00 : f32
    %182 = vector.broadcast %cst_89 : f32 to vector<33x512xf32>
    %183 = arith.maximumf %181, %182 : vector<33x512xf32>
    %c0_90 = arith.constant 0 : index
    %c0_91 = arith.constant 0 : index
    %184 = vector.load %arg3[%c0_90, %c0_91] : memref<1x33xf32, #tpu.memory_space<vmem>>, vector<1x33xf32>
    %cst_92 = arith.constant dense<0.000000e+00> : vector<1x512xf32>
    %185 = tpu.matmul %184, %183, %cst_92 {dimension_numbers = #tpu.dot_dimension_numbers<[1], [0], [0], [1], [0, 0, 1, 1], [], []>} : vector<1x33xf32>, vector<33x512xf32>, vector<1x512xf32> -> vector<1x512xf32>
    %186 = tpu.iota {dimensions = array<i32: 1>} : vector<1x128xi32>
    %cst_93 = arith.constant 0.000000e+00 : f32
    %187 = vector.broadcast %cst_93 : f32 to vector<1x128xf32>
    %188 = vector.extract_strided_slice %185 {offsets = [0, 0], sizes = [1, 256], strides = [1, 1]} : vector<1x512xf32> to vector<1x256xf32>
    %189 = vector.shape_cast %188 : vector<1x256xf32> to vector<1x1x256xf32>
    %cst_94 = arith.constant dense<0.000000e+00> : vector<1xf32>
    %190 = vector.multi_reduction <add>, %189, %cst_94 [1, 2] : vector<1x1x256xf32> to vector<1xf32>
    %191 = vector.shape_cast %190 : vector<1xf32> to vector<1x1x1xf32>
    %192 = vector.extract %191[0, 0, 0] : f32 from vector<1x1x1xf32>
    %cst_95 = arith.constant 3.906250e-03 : f32
    %193 = arith.mulf %192, %cst_95 : f32
    %c0_i32_96 = arith.constant 0 : i32
    %194 = vector.broadcast %c0_i32_96 : i32 to vector<1x128xi32>
    %195 = arith.cmpi eq, %186, %194 : vector<1x128xi32>
    %196 = vector.broadcast %193 : f32 to vector<1x128xf32>
    %197 = arith.select %195, %196, %187 : vector<1x128xi1>, vector<1x128xf32>
    %198 = vector.extract_strided_slice %185 {offsets = [0, 256], sizes = [1, 256], strides = [1, 1]} : vector<1x512xf32> to vector<1x256xf32>
    %199 = vector.shape_cast %198 : vector<1x256xf32> to vector<1x1x256xf32>
    %cst_97 = arith.constant dense<0.000000e+00> : vector<1xf32>
    %200 = vector.multi_reduction <add>, %199, %cst_97 [1, 2] : vector<1x1x256xf32> to vector<1xf32>
    %201 = vector.shape_cast %200 : vector<1xf32> to vector<1x1x1xf32>
    %202 = vector.extract %201[0, 0, 0] : f32 from vector<1x1x1xf32>
    %cst_98 = arith.constant 3.906250e-03 : f32
    %203 = arith.mulf %202, %cst_98 : f32
    %c1_i32_99 = arith.constant 1 : i32
    %204 = vector.broadcast %c1_i32_99 : i32 to vector<1x128xi32>
    %205 = arith.cmpi eq, %186, %204 : vector<1x128xi32>
    %206 = vector.broadcast %203 : f32 to vector<1x128xf32>
    %207 = arith.select %205, %206, %197 : vector<1x128xi1>, vector<1x128xf32>
    %c0_100 = arith.constant 0 : index
    %c0_101 = arith.constant 0 : index
    %208 = vector.load %arg4[%c0_100, %c0_101] : memref<1x128xf32, #tpu.memory_space<vmem>>, vector<1x128xf32>
    tpu.vector_store %arg4[%c0_100, %c0_101], %207 {strides = array<i32>} : memref<1x128xf32, #tpu.memory_space<vmem>>, vector<1x128xf32>,
    return
  }
  func.func @transform_0(%arg0: i32) -> (i32, i32) {
    %c0_i32 = arith.constant 0 : i32
    %c0_i32_0 = arith.constant 0 : i32
    %c0_i32_1 = arith.constant 0 : i32
    return %c0_i32, %c0_i32_0 : i32, i32
  }
  func.func @transform_1(%arg0: i32) -> (i32, i32) {
    %c0_i32 = arith.constant 0 : i32
    %c0_i32_0 = arith.constant 0 : i32
    %c0_i32_1 = arith.constant 0 : i32
    return %c0_i32, %c0_i32_0 : i32, i32
  }
  func.func @transform_2(%arg0: i32) -> (i32, i32) {
    %c0_i32 = arith.constant 0 : i32
    %c0_i32_0 = arith.constant 0 : i32
    %c0_i32_1 = arith.constant 0 : i32
    return %c0_i32, %c0_i32_0 : i32, i32
  }
  func.func @transform_3(%arg0: i32) -> (i32, i32) {
    %c0_i32 = arith.constant 0 : i32
    %c0_i32_0 = arith.constant 0 : i32
    %c0_i32_1 = arith.constant 0 : i32
    return %c0_i32, %c0_i32_0 : i32, i32
  }
}

</mosaic_0001>

<bundles_post_ra>
// kernel: f_forward.1
= control target key start
LH: loop header
LB: loop body
LE: loop exit
PB: predicated region body
PF: predicated region fallthrough
CT: control target
= control target key end

     0   :  { %v16_v0 = vlaneseq  ;;  %s781_s16 = smov 17   ;;  %s782_s17 = smov 1   ;;  %v783_v3 = vmov 1.0   ;;  %v790_v6 = vmov 0.0   ;;  %vm56_vm1 = vcmask 138240   ;;  %s918_s0 = inlined_call_operand.vmem [shape: f32[8,256], index: 0, kind: input, shape index: {}]   ;;  %s919_s1 = inlined_call_operand.vmem [shape: f32[33,37], index: 1, kind: input, shape index: {}]   ;;  %s920_s2 = inlined_call_operand.vmem [shape: f32[1,33], index: 2, kind: input, shape index: {}]   ;;  %s921_s3 = inlined_call_operand.vmem [shape: f32[1,128], index: 3, kind: output, shape index: {}]  }
   0x1   :  { %v14_v1 = vld [vmem:[%s918_s0] sm:$0xff]  ;;  %v15_v2 = vld [vmem:[%s918_s0 + $0x8] sm:$0xff]  ;;  %s784_s18 = smov 16   ;;  %s785_s19 = smov 15   ;;  %372 = vmatprep.mubr.f32.mxu0 %v790_v6  ;;  %467 = vmatprep.mubr.f32.mxu1 %v790_v6  ;;  %vm141_vm2 = vcmask 7168   ;;  %vm85_vm5 = vcmask 130048  }
   0x2   :  { %52 = vrot.lane.b32.xlu1 %v14_v1, %s781_s16  ;;  %160 = vst [vmem:[#allocation2 + $0x40] sm:$0xf] %v14_v1  ;;  %137 = vrot.lane.b32.xlu0 %v14_v1, %s782_s17  ;;  %161 = vst [vmem:[#allocation2 + $0x48] sm:$0xf] %v15_v2  ;;  %vm45_vm0 = vcmp.lt.s32.totalorder %v16_v0, 512  ;;  %v165_v4 = vrot.slane %v15_v2, 4 }
   0x3   :  { %48 = vst.msk [vmem:[#allocation2 + $0x84] ss:$8 sm:$0xf] %vm45_vm0, %v783_v3  ;;  %v164_v5 = vrot.slane %v14_v1, 4  ;;  %s786_s0 = smov 127   ;;  %s787_s20 = smov 112  }
   0x4   :  { %169 = vst [vmem:[#allocation2 + $0x58] sm:$0xf] %v165_v4  ;;  %s788_s21 = smov 113   ;;  %s789_s22 = smov 111   ;;  %v819_v7 = vand.u32 127, %v16_v0  ;;  %vm112_vm6 = vcmask 121856  }
   0x5   :  { %168 = vst [vmem:[#allocation2 + $0x50] sm:$0xf] %v164_v5  ;;  %vm174_vm9 = vcmask 1039360   ;;  %vm216_vm10 = vcmask 916480   ;;  %vm195_vm11 = vcmask 924672   ;;  %vm237_vm12 = vcmask 908288  }
   0x6   :  { %54 = vrot.lane.b32.xlu1 %v15_v2, %s781_s16  ;;  %139 = vrot.lane.b32.xlu0 %v15_v2, %s782_s17  ;;  %v23_v8 = vand.u32 15, %v819_v7  ;;  %v18_v9 = vadd.s32 128, %v819_v7  ;;  %vm295_vm13 = vcmask 1044480   ;;  %vm279_vm14 = vcmask 302080  }
   0x7   :  { %vm523_vm15 = vcmask 1040384   ;;  %vm519_vm0 = vcmask 269312  }
   0x8   :  { %v823_v10 = vadd.s32 4294967295, %v23_v8  ;;  %v30_v11 = vand.u32 15, %v18_v9  ;;  %v841_v29 = vadd.s32 1, %v23_v8 }
   0xa   :  { %83 = vrot.lane.b32.xlu1 %v15_v2, %s784_s18  ;;  %81 = vrot.lane.b32.xlu0 %v14_v1, %s784_s18  ;;  %vm63_vm3 = vcmp.ge.s32.totalorder %v823_v10, 0  ;;  %v826_v12 = vadd.s32 4294967295, %v30_v11  ;;  %v843_v30 = vadd.s32 1, %v30_v11  ;;  %vm121_vm7 = vcmp.lt.s32.totalorder %v841_v29, 16 }
   0xc   :  { %vm64_vm4 = vcmp.ge.s32.totalorder %v826_v12, 0  ;;  %vm122_vm8 = vcmp.lt.s32.totalorder %v843_v30, 16 }
   0xe   :  { %110 = vrot.lane.b32.xlu1 %v15_v2, %s785_s19  ;;  %108 = vrot.lane.b32.xlu0 %v14_v1, %s785_s19 }
  0x12   :  { %170 = vrot.lane.b32.xlu1 %v14_v1, %s786_s0  ;;  %172 = vrot.lane.b32.xlu0 %v15_v2, %s786_s0 }
  0x16   :  { %214 = vrot.lane.b32.xlu1 %v15_v2, %s787_s20  ;;  %193 = vrot.lane.b32.xlu0 %v15_v2, %s788_s21 }
  0x1a   :  { %212 = vrot.lane.b32.xlu1 %v14_v1, %s787_s20  ;;  %191 = vrot.lane.b32.xlu0 %v14_v1, %s788_s21 }
  0x1e   :  { %233 = vrot.lane.b32.xlu1 %v14_v1, %s789_s22  ;;  %235 = vrot.lane.b32.xlu0 %v15_v2, %s789_s22 }
  0x74   :  { %v53_v13 = vpop.permute.xlu1 %52  ;;  %v138_v14 = vpop.permute.xlu0 %137 }
  0x75   :  { %v60_v15 = vsel %vm56_vm1, 0.0, %v53_v13  ;;  %v145_v16 = vsel %vm141_vm2, 0.0, %v138_v14 }
  0x76   :  { %v69_v17 = vsel %vm63_vm3, %v60_v15, 0.0  ;;  %v146_v18 = vsel %vm63_vm3, %v145_v16, 0.0 }
  0x77   :  { %71 = vst [vmem:[#allocation2] sm:$0xf] %v69_v17  ;;  %v75_v19 = vrot.slane %v69_v17, 4  ;;  %v150_v20 = vrot.slane %v146_v18, 4  ;;  %156 = vst [vmem:[#allocation2 + $0x30] sm:$0xf0] %v146_v18 }
  0x78   :  { %v55_v21 = vpop.permute.xlu1 %54  ;;  %v140_v22 = vpop.permute.xlu0 %139 }
  0x79   :  { %79 = vst [vmem:[#allocation2 + $0x10] sm:$0xf] %v75_v19  ;;  %154 = vst [vmem:[#allocation2 + $0x20] sm:$0xf0] %v150_v20  ;;  %v57_v23 = vsel %vm56_vm1, %v53_v13, %v55_v21  ;;  %v142_v24 = vsel %vm141_vm2, %v138_v14, %v140_v22  ;;  %vm691_vm1 = vcmp.eq.s32.totalorder %v819_v7, 0  ;;  %vm707_vm2 = vcmp.eq.s32.totalorder %v819_v7, 1 }
  0x7a   :  { %v70_v25 = vsel %vm64_vm4, %v57_v23, 0.0  ;;  %v147_v26 = vsel %vm64_vm4, %v142_v24, 0.0 }
  0x7b   :  { %72 = vst [vmem:[#allocation2 + $0x8] sm:$0xf] %v70_v25  ;;  %v76_v27 = vrot.slane %v70_v25, 4  ;;  %v151_v28 = vrot.slane %v147_v26, 4  ;;  %157 = vst [vmem:[#allocation2 + $0x38] sm:$0xf0] %v147_v26 }
  0x7c   :  { %v84_v31 = vpop.permute.xlu1 %83  ;;  %v82_v32 = vpop.permute.xlu0 %81 }
  0x7d   :  { %80 = vst [vmem:[#allocation2 + $0x18] sm:$0xf] %v76_v27  ;;  %155 = vst [vmem:[#allocation2 + $0x28] sm:$0xf0] %v151_v28  ;;  %v86_v33 = vsel %vm85_vm5, %v82_v32, %v84_v31  ;;  %v89_v34 = vsel %vm85_vm5, 0.0, %v82_v32 }
  0x7e   :  { %v100_v35 = vrot.slane %v89_v34, 4  ;;  %v101_v36 = vrot.slane %v86_v33, 4  ;;  %106 = vst [vmem:[#allocation2 + $0x10] sm:$0xf0] %v89_v34  ;;  %107 = vst [vmem:[#allocation2 + $0x18] sm:$0xf0] %v86_v33 }
  0x80   :  { %104 = vst [vmem:[#allocation2] sm:$0xf0] %v100_v35  ;;  %105 = vst [vmem:[#allocation2 + $0x8] sm:$0xf0] %v101_v36  ;;  %v111_v37 = vpop.permute.xlu1 %110  ;;  %v109_v38 = vpop.permute.xlu0 %108 }
  0x81   :  { %v113_v39 = vsel %vm112_vm6, %v109_v38, %v111_v37  ;;  %v116_v40 = vsel %vm112_vm6, 0.0, %v109_v38 }
  0x82   :  { %v125_v41 = vsel %vm121_vm7, %v116_v40, 0.0  ;;  %v126_v42 = vsel %vm122_vm8, %v113_v39, 0.0  ;;  %v254_v39 = vld [vmem:[%s919_s1] sm:$0xff] }
  0x83   :  { %127 = vst [vmem:[#allocation2 + $0x20] sm:$0xf] %v125_v41  ;;  %128 = vst [vmem:[#allocation2 + $0x28] sm:$0xf] %v126_v42  ;;  %v131_v43 = vrot.slane %v125_v41, 4  ;;  %v132_v44 = vrot.slane %v126_v42, 4 }
  0x84   :  { %v171_v45 = vpop.permute.xlu1 %170  ;;  %v173_v46 = vpop.permute.xlu0 %172  ;;  %v255_v42 = vld [vmem:[%s919_s1 + $0x8] sm:$0xff] }
  0x85   :  { %135 = vst [vmem:[#allocation2 + $0x30] sm:$0xf] %v131_v43  ;;  %136 = vst [vmem:[#allocation2 + $0x38] sm:$0xf] %v132_v44  ;;  %v175_v47 = vsel %vm174_vm9, %v171_v45, %v173_v46  ;;  %v178_v48 = vsel %vm174_vm9, %v173_v46, 0.0  ;;  %v262_v2 = vld [vmem:[#allocation2 + $0x18] sm:$0xff] }
  0x86   :  { %v179_v49 = vsel %vm121_vm7, %v175_v47, 0.0  ;;  %v180_v50 = vsel %vm122_vm8, %v178_v48, 0.0  ;;  %v261_v8 = vld [vmem:[#allocation2 + $0x10] sm:$0xff]  ;;  %v257_v44 = vld [vmem:[%s919_s1 + $0x18] sm:$0xff]  ;;  %v258_v45 = vld [vmem:[%s919_s1 + $0x20] sm:$0x1] }
  0x87   :  { %v183_v51 = vrot.slane %v179_v49, 4  ;;  %v184_v52 = vrot.slane %v180_v50, 4  ;;  %189 = vst [vmem:[#allocation2 + $0x50] sm:$0xf0] %v179_v49  ;;  %190 = vst [vmem:[#allocation2 + $0x58] sm:$0xf0] %v180_v50 }
  0x88   :  { %v215_v53 = vpop.permute.xlu1 %214  ;;  %v194_v54 = vpop.permute.xlu0 %193  ;;  %v260_v57 = vld [vmem:[#allocation2 + $0x8] sm:$0xff]  ;;  %v259_v61 = vld [vmem:[#allocation2] sm:$0xff]  ;;  %v256_v43 = vld [vmem:[%s919_s1 + $0x10] sm:$0xff] }
  0x89   :  { %187 = vst [vmem:[#allocation2 + $0x40] sm:$0xf0] %v183_v51  ;;  %188 = vst [vmem:[#allocation2 + $0x48] sm:$0xf0] %v184_v52  ;;  %v220_v55 = vsel %vm216_vm10, %v215_v53, 0.0  ;;  %v199_v56 = vsel %vm195_vm11, %v194_v54, 0.0 }
  0x8a   :  { %v226_v58 = vrot.slane %v220_v55, 4  ;;  %232 = vst [vmem:[#allocation2 + $0x78] sm:$0xf0] %v220_v55  ;;  %v201_v59 = vsel %vm64_vm4, %v199_v56, 0.0  ;;  %v264_v60 = vld [vmem:[#allocation2 + $0x28] sm:$0xff]  ;;  %v263_v62 = vld [vmem:[#allocation2 + $0x20] sm:$0xff] }
  0x8b   :  { %203 = vst [vmem:[#allocation2 + $0x68] sm:$0xf] %v201_v59  ;;  %v207_v63 = vrot.slane %v201_v59, 4  ;;  %v735_v0 = vpack.c.bf16 %v264_v60, %v260_v57  ;;  %v737_v1 = vpack.c.bf16 %v263_v62, %v259_v61 }
  0x8c   :  { %230 = vst [vmem:[#allocation2 + $0x68] sm:$0xf0] %v226_v58  ;;  %v213_v3 = vpop.permute.xlu1 %212  ;;  %v192_v4 = vpop.permute.xlu0 %191  ;;  %v266_v5 = vld [vmem:[#allocation2 + $0x38] sm:$0xff]  ;;  %v265_v9 = vld [vmem:[#allocation2 + $0x30] sm:$0xff] }
  0x8d   :  { %211 = vst [vmem:[#allocation2 + $0x78] sm:$0xf] %v207_v63  ;;  %v217_v11 = vsel %vm216_vm10, %v213_v3, %v215_v53  ;;  %v196_v12 = vsel %vm195_vm11, %v192_v4, %v194_v54  ;;  %736 = vmatprep.subr.bf16.mxu0 %v735_v0  ;;  %v743_v13 = vpack.c.bf16 %v266_v5, %v262_v2 }
  0x8e   :  { %v745_v14 = vpack.c.bf16 %v265_v9, %v261_v8  ;;  %v225_v15 = vrot.slane %v217_v11, 4  ;;  %231 = vst [vmem:[#allocation2 + $0x70] sm:$0xf0] %v217_v11  ;;  %v200_v16 = vsel %vm63_vm3, %v196_v12, 0.0  ;;  %738 = vmatpush1.bf16.msra.mxu0 %v737_v1  ;;  %v270_v28 = vld [vmem:[#allocation2 + $0x58] sm:$0xff]  ;;  %v269_v35 = vld [vmem:[#allocation2 + $0x50] sm:$0xff] }
  0x8f   :  { %202 = vst [vmem:[#allocation2 + $0x60] sm:$0xf] %v200_v16  ;;  %v206_v17 = vrot.slane %v200_v16, 4  ;;  %744 = vmatprep.subr.bf16.mxu1 %v743_v13 }
  0x90   :  { %229 = vst [vmem:[#allocation2 + $0x60] sm:$0xf0] %v225_v15  ;;  %746 = vmatpush1.bf16.msra.mxu1 %v745_v14  ;;  %v234_v18 = vpop.permute.xlu1 %233  ;;  %v236_v19 = vpop.permute.xlu0 %235  ;;  %v268_v25 = vld [vmem:[#allocation2 + $0x48] sm:$0xff]  ;;  %v267_v33 = vld [vmem:[#allocation2 + $0x40] sm:$0xff] }
  0x91   :  { %210 = vst [vmem:[#allocation2 + $0x70] sm:$0xf] %v206_v17  ;;  %v238_v20 = vsel %vm237_vm12, %v234_v18, %v236_v19  ;;  %v241_v21 = vsel %vm237_vm12, %v236_v19, 0.0 }
  0x92   :  { %v242_v22 = vsel %vm121_vm7, %v238_v20, 0.0  ;;  %v243_v23 = vsel %vm122_vm8, %v241_v21, 0.0 }
  0x93   :  { %244 = vst [vmem:[#allocation2 + $0x80] sm:$0xf] %v242_v22  ;;  %245 = vst [vmem:[#allocation2 + $0x88] sm:$0xf] %v243_v23  ;;  %v248_v10 = vrot.slane %v242_v22, 4  ;;  %v249_v24 = vrot.slane %v243_v23, 4 }
  0x94   :  { %v272_v26 = vld [vmem:[#allocation2 + $0x68] sm:$0xff]  ;;  %v274_v31 = vld [vmem:[#allocation2 + $0x78] sm:$0xff] }
  0x95   :  { %v739_v27 = vpack.c.bf16 %v272_v26, %v268_v25  ;;  %252 = vst [vmem:[#allocation2 + $0x90] sm:$0xf] %v248_v10  ;;  %253 = vst [vmem:[#allocation2 + $0x98] sm:$0xf] %v249_v24  ;;  %v747_v32 = vpack.c.bf16 %v274_v31, %v270_v28 }
  0x97   :  { %740 = vmatprep.subr.bf16.mxu0 %v739_v27  ;;  %748 = vmatprep.subr.bf16.mxu1 %v747_v32  ;;  %v271_v29 = vld [vmem:[#allocation2 + $0x60] sm:$0xff] }
  0x98   :  { %v741_v34 = vpack.c.bf16 %v271_v29, %v267_v33  ;;  %v273_v30 = vld [vmem:[#allocation2 + $0x70] sm:$0xff]  ;;  %v518_v32 = vld [vmem:[%s920_s2] sm:$0x1] }
  0x99   :  { %v749_v36 = vpack.c.bf16 %v273_v30, %v269_v35 }
  0x9a   :  { %742 = vmatpush1.bf16.msra.mxu0 %v741_v34  ;;  %v276_v37 = vld [vmem:[#allocation2 + $0x88] sm:$0x1f]  ;;  %v275_v41 = vld [vmem:[#allocation2 + $0x80] sm:$0x1f] }
  0x9b   :  { %750 = vmatpush1.bf16.msra.mxu1 %v749_v36  ;;  %715 = vmatprep.subr.msk.mxu0 %vm295_vm13, %v276_v37 }
  0x9c   :  { %v278_v38 = vld [vmem:[#allocation2 + $0x98] sm:$0x1f]  ;;  %v277_v40 = vld [vmem:[#allocation2 + $0x90] sm:$0x1f] }
  0x9d   :  { %722 = vmatprep.subr.msk.mxu1 %vm295_vm13, %v278_v38 }
  0x9e   :  { %716 = vmatpush1.msk.msra.mxu0 %vm295_vm13, %v275_v41 }
  0x9f   :  { %717 = vmatmul.mubr.msk.f32.vlgmr.msra.gmra.mrb[0].mxu0 %vm279_vm14, %v254_v39  ;;  %723 = vmatpush1.msk.msra.mxu1 %vm295_vm13, %v277_v40 }
  0xa0   :  { %724 = vmatmul.mubr.msk.f32.vlgmr.msra.gmra.mrb[0].mxu1 %vm279_vm14, %v254_v39  ;;  %378 = vmatprep.mubr.f32.mxu0 %v790_v6 }
  0xa1   :  { %473 = vmatprep.mubr.f32.mxu1 %v790_v6 }
  0xa3   :  { %718 = vmatmul.mubr.msk.f32.gmra.mrb[2].mxu0 %vm279_vm14, %v255_v42 }
  0xa4   :  { %725 = vmatmul.mubr.msk.f32.gmra.mrb[2].mxu1 %vm279_vm14, %v255_v42  ;;  %384 = vmatprep.mubr.f32.mxu0 %v790_v6 }
  0xa5   :  { %479 = vmatprep.mubr.f32.mxu1 %v790_v6 }
  0xa7   :  { %719 = vmatmul.mubr.msk.f32.gmra.mrb[4].mxu0 %vm279_vm14, %v256_v43 }
  0xa8   :  { %726 = vmatmul.mubr.msk.f32.gmra.mrb[4].mxu1 %vm279_vm14, %v256_v43  ;;  %390 = vmatprep.mubr.f32.mxu0 %v790_v6 }
  0xa9   :  { %485 = vmatprep.mubr.f32.mxu1 %v790_v6 }
  0xab   :  { %720 = vmatmul.mubr.msk.f32.gmra.mrb[6].mxu0 %vm279_vm14, %v257_v44 }
  0xac   :  { %727 = vmatmul.mubr.msk.f32.gmra.mrb[6].mxu1 %vm279_vm14, %v257_v44  ;;  %396 = vmatprep.mubr.f32.mxu0 %v790_v6 }
  0xad   :  { %491 = vmatprep.mubr.f32.mxu1 %v790_v6 }
  0xaf   :  { %721 = vmatmul.mubr.msk.f32.gmra.mrb[8].mxu0 %vm279_vm14, %v258_v45 }
  0xb0   :  { %728 = vmatmul.mubr.msk.f32.gmra.mrb[8].mxu1 %vm279_vm14, %v258_v45  ;;  %600 = vmatprep.mubr.f32.mxu0 %v790_v6 }
  0xb1   :  { %671 = vmatprep.mubr.f32.mxu1 %v790_v6 }
 0x172   :  { %v374_v46 = vpop.f32.mrb[0].mxu0 }
 0x173   :  { %v376_v47 = vpop.f32.mrb[1].mxu0  ;;  %v469_v48 = vpop.f32.mrb[0].mxu1  ;;  %v498_v51 = vmax.f32 %v374_v46, 0.0 }
 0x174   :  { %v471_v49 = vpop.f32.mrb[1].mxu1  ;;  %v499_v55 = vmax.f32 %v376_v47, 0.0  ;;  %v500_v56 = vmax.f32 %v469_v48, 0.0 }
 0x175   :  { %v501_v60 = vmax.f32 %v471_v49, 0.0 }
 0x176   :  { %v380_v50 = vpop.f32.mrb[2].mxu0 }
 0x177   :  { %v502_v52 = vmax.f32 %v380_v50, 0.0  ;;  %v382_v53 = vpop.f32.mrb[3].mxu0  ;;  %v475_v54 = vpop.f32.mrb[2].mxu1 }
 0x178   :  { %v503_v57 = vmax.f32 %v382_v53, 0.0  ;;  %v504_v58 = vmax.f32 %v475_v54, 0.0  ;;  %v477_v59 = vpop.f32.mrb[3].mxu1 }
 0x179   :  { %v753_v61 = vpack.c.bf16 %v502_v52, %v498_v51  ;;  %v505_v62 = vmax.f32 %v477_v59, 0.0 }
 0x17a   :  { %v751_v63 = vpack.c.bf16 %v503_v57, %v499_v55  ;;  %v761_v0 = vpack.c.bf16 %v504_v58, %v500_v56  ;;  %v386_v6 = vpop.f32.mrb[4].mxu0 }
 0x17b   :  { %v759_v1 = vpack.c.bf16 %v505_v62, %v501_v60  ;;  %v388_v2 = vpop.f32.mrb[5].mxu0  ;;  %v481_v3 = vpop.f32.mrb[4].mxu1  ;;  %v506_v8 = vmax.f32 %v386_v6, 0.0 }
 0x17c   :  { %v483_v4 = vpop.f32.mrb[5].mxu1  ;;  %752 = vmatprep.subr.bf16.mxu0 %v751_v63  ;;  %v507_v13 = vmax.f32 %v388_v2, 0.0  ;;  %v508_v14 = vmax.f32 %v481_v3, 0.0 }
 0x17d   :  { %754 = vmatpush1.bf16.msra.mxu0 %v753_v61  ;;  %760 = vmatprep.subr.bf16.mxu1 %v759_v1  ;;  %v509_v18 = vmax.f32 %v483_v4, 0.0 }
 0x17e   :  { %v392_v5 = vpop.f32.mrb[6].mxu0  ;;  %762 = vmatpush1.bf16.msra.mxu1 %v761_v0 }
 0x17f   :  { %v510_v9 = vmax.f32 %v392_v5, 0.0  ;;  %v394_v11 = vpop.f32.mrb[7].mxu0  ;;  %v487_v12 = vpop.f32.mrb[6].mxu1 }
 0x180   :  { %v511_v15 = vmax.f32 %v394_v11, 0.0  ;;  %v512_v16 = vmax.f32 %v487_v12, 0.0  ;;  %v489_v17 = vpop.f32.mrb[7].mxu1 }
 0x181   :  { %v757_v19 = vpack.c.bf16 %v510_v9, %v506_v8  ;;  %v513_v20 = vmax.f32 %v489_v17, 0.0 }
 0x182   :  { %v755_v21 = vpack.c.bf16 %v511_v15, %v507_v13  ;;  %v765_v22 = vpack.c.bf16 %v512_v16, %v508_v14  ;;  %v398_v23 = vpop.f32.mrb[8].mxu0 }
 0x183   :  { %v763_v10 = vpack.c.bf16 %v513_v20, %v509_v18  ;;  %v400_v24 = vpop.f32.mrb[9].mxu0  ;;  %v493_v25 = vpop.f32.mrb[8].mxu1  ;;  %v514_v31 = vmax.f32 %v398_v23, 0.0 }
 0x184   :  { %756 = vmatprep.subr.bf16.mxu0 %v755_v21  ;;  %v515_v26 = vmax.f32 %v400_v24, 0.0  ;;  %v495_v27 = vpop.f32.mrb[9].mxu1  ;;  %v516_v33 = vmax.f32 %v493_v25, 0.0 }
 0x185   :  { %758 = vmatpush1.bf16.msra.mxu0 %v757_v19  ;;  %764 = vmatprep.subr.bf16.mxu1 %v763_v10  ;;  %v517_v28 = vmax.f32 %v495_v27, 0.0 }
 0x186   :  { %766 = vmatpush1.bf16.msra.mxu1 %v765_v22  ;;  %729 = vmatprep.subr.msk.mxu0 %vm523_vm15, %v515_v26 }
 0x187   :  { %732 = vmatprep.subr.msk.mxu1 %vm523_vm15, %v517_v28 }
 0x189   :  { %730 = vmatpush1.msk.msra.mxu0 %vm523_vm15, %v514_v31 }
 0x18a   :  { %731 = vmatmul.mubr.msk.f32.vlgmr.msra.gmra.mrb[10].mxu0 %vm519_vm0, %v518_v32  ;;  %733 = vmatpush1.msk.msra.mxu1 %vm523_vm15, %v516_v33 }
 0x18b   :  { %734 = vmatmul.mubr.msk.f32.vlgmr.msra.gmra.mrb[10].mxu1 %vm519_vm0, %v518_v32 }
 0x25d   :  { %v602_v29 = vpop.f32.mrb[10].mxu0 }
 0x25e   :  { %v678_v34 = vsel %vm523_vm15, %v602_v29, 0.0  ;;  %v604_v35 = vpop.f32.mrb[11].mxu0  ;;  %v673_v30 = vpop.f32.mrb[10].mxu1 }
 0x25f   :  { %v679_v36 = vsel %vm523_vm15, %v604_v35, 0.0  ;;  %v694_v37 = vsel %vm523_vm15, %v673_v30, 0.0  ;;  %v675_v38 = vpop.f32.mrb[11].mxu1 }
 0x260   :  { %v695_v39 = vsel %vm523_vm15, %v675_v38, 0.0  ;;  %v680_v40 = vadd.f32 %v679_v36, %v678_v34 }
 0x261   :  { %v696_v41 = vadd.f32 %v695_v39, %v694_v37 }
 0x262   :  { %681 = vadd.xlane.f32.xlu0 %v680_v40 }
 0x263   :  { %697 = vadd.xlane.f32.xlu1 %v696_v41 }
 0x2ef   :  { %v682_v42 = vpop.xlane.xlu0 %681 }
 0x2f0   :  { %v683_v43 = vrot.slane %v682_v42, 4  ;;  %v698_v44 = vpop.xlane.xlu1 %697 }
 0x2f1   :  { %v699_v45 = vrot.slane %v698_v44, 4 }
 0x2f2   :  { %v684_v46 = vadd.f32 %v683_v43, %v682_v42 }
 0x2f3   :  { %v700_v47 = vadd.f32 %v699_v45, %v698_v44 }
 0x2f4   :  { %v685_v48 = vrot.slane %v684_v46, 2 }
 0x2f5   :  { %v701_v49 = vrot.slane %v700_v47, 2 }
 0x2f6   :  { %v686_v50 = vadd.f32 %v685_v48, %v684_v46 }
 0x2f7   :  { %v702_v51 = vadd.f32 %v701_v49, %v700_v47 }
 0x2f8   :  { %v687_v52 = vrot.slane %v686_v50, 1 }
 0x2f9   :  { %v703_v53 = vrot.slane %v702_v51, 1 }
 0x2fa   :  { %v688_v54 = vadd.f32 %v687_v52, %v686_v50 }
 0x2fb   :  { %v704_v55 = vadd.f32 %v703_v53, %v702_v51 }
 0x2fc   :  { %767 = vpush %v688_v54 }
 0x2fd   :  { %769 = vpush %v704_v55 }
 0x32d   :  { %s768_s2 = spop %767 }
 0x32e   :  { %s690_s7 = smul.f32 0.00390625, %s768_s2  ;;  %s770_s8 = spop %769 }
 0x32f   :  { %s706_s9 = smul.f32 0.00390625, %s770_s8 }
 0x330   :  { %v692_v56 = vstv %s690_s7 }
 0x331   :  { %v693_v57 = vsel %vm691_vm1, %v692_v56, 0.0  ;;  %v708_v58 = vstv %s706_s9 }
 0x332   :  { %v709_v59 = vsel %vm707_vm2, %v708_v58, %v693_v57 }
 0x333   :  { %710 = vst [vmem:[%s921_s3] sm:$0x1] %v709_v59 }

</bundles_post_ra>
